<compile_context>
chip_gen: v7x
topology: tpu7x:2x2x1
jax: 0.10.0
libtpu: 0.0.40
codegen_flags: <defaults>
</compile_context>

<pallas_src>
import functools

import jax
import jax.numpy as jnp
from jax.experimental import pallas as pl
from jax.experimental.pallas import tpu as pltpu


def _round_up(x, m):
    return (x + m - 1) // m * m


def _device_kind():
    try:
        return jax.devices()[0].device_kind.lower()
    except Exception:  # pragma: no cover - defensive, e.g. no device yet
        return ""


_LANE_WIDTHS = (512, 256, 128)


def _pick_flat_width(n, c):
    """Pick a lane-dense flat width when C is not already a lane multiple."""
    if c % 128 == 0:
        return None          # already lane-dense; reshape gains nothing
    total = n * c
    for w in _LANE_WIDTHS:
        if total % w == 0:
            return w
    return None              # keep (N, C) and eat the lane padding


def _focal_kernel(logit_ref, target_ref, out_ref, acc_ref, *,
                  gamma, n_rows, tile_rows, steps_per_split,
                  mask_rows, binary_targets, approx_recip):
    p_idx = pl.program_id(0)          # split index (parallel axis)
    j = pl.program_id(1)              # reduction step within the split

    @pl.when(j == 0)
    def _():
        acc_ref[...] = jnp.zeros_like(acc_ref)

    x = logit_ref[...].astype(jnp.float32)
    t = target_ref[...].astype(jnp.float32)

    # Stable BCE-with-logits:  max(x,0) - x*t + log1p(exp(-|x|))   (2 EUP ops)
    e_abs = jnp.exp(-jnp.abs(x))
    bce = jnp.maximum(x, 0.0) - x * t + jnp.log1p(e_abs)

    # Focal weight = sigmoid(z) ** gamma, with z = -x * (2t - 1).
    z = -x * (t * 2.0 - 1.0)
    if binary_targets:
        # For t in {0,1}: |z| == |x|, so exp(-|z|) == exp(-|x|) (reuse, 0 EUP).
        ez = e_abs
    else:
        ez = jnp.exp(-jnp.abs(z))                       # soft labels: 1 EUP

    num = jnp.where(z >= 0.0, 1.0, ez)                  # stable sigmoid numer.
    if approx_recip:
        p = num * pl.reciprocal(1.0 + ez, approx=True)  # single cheap vrcp
    else:
        p = num / (1.0 + ez)

    g = float(gamma)
    if g.is_integer() and 0 <= int(g) <= 8:
        gi = int(g)
        if gi == 0:
            w = jnp.ones_like(p)
        else:
            w = p
            for _ in range(gi - 1):                     # VPU multiplies only
                w = w * p
    else:
        # Non-integer gamma: exp(gamma * logsigmoid(z)).
        w = jnp.exp(g * (jnp.minimum(z, 0.0) - jnp.log1p(ez)))

    loss = w * bce
    c = loss.shape[1]

    def accumulate(vals):
        # (tile_rows, C) -> (8, C) with VPU adds only (leading-axis reshape is
        # layout-free); the single XLU reduce is deferred to the finalize.
        acc_ref[...] += vals.reshape(tile_rows // 8, 8, c).sum(axis=0)

    if mask_rows:
        # Only the genuine tail block and clamped duplicate blocks need the
        # mask; interior steps accumulate unmasked (saves ~3 VPU ops/elem).
        blk = p_idx * steps_per_split + j               # unclamped block index
        needs_mask = (blk + 1) * tile_rows > n_rows

        @pl.when(needs_mask)
        def _():
            row0 = blk * tile_rows                      # unclamped: duplicates
            rows = row0 + jax.lax.broadcasted_iota(     # get fully zeroed
                jnp.int32, (tile_rows, 1), 0)
            accumulate(jnp.where(rows < n_rows, loss, 0.0))

        @pl.when(jnp.logical_not(needs_mask))
        def _():
            accumulate(loss)
    else:
        accumulate(loss)

    @pl.when(j == pl.num_programs(1) - 1)
    def _():
        out_ref[...] = jnp.sum(acc_ref[...], keepdims=True)


def focal_loss(logit, target, gamma=2, *, tile_rows=None, num_splits=None,
               binary_targets=True, approx_recip=True):
    """Pallas focal loss. logit, target: (N, C). Returns scalar f32 mean loss.

    binary_targets=True assumes 0/1 labels (lets the kernel reuse exp(-|x|));
    set False for soft multilabel targets. approx_recip=False uses an exact
    divide for the sigmoid (bit-tighter numerics, one extra EUP+VPU chain).
    """
    assert logit.ndim == 2 and logit.shape == target.shape
    n_batch, c_orig = logit.shape

    kind = _device_kind()
    is_v7 = "v7" in kind
    if num_splits is None:
        # Only v7x has 2 TensorCores to shard the "parallel" axis across.
        num_splits = 2 if is_v7 else 1

    # ---- lane-dense flattening (free bitcast reshape) ----------------------
    w = _pick_flat_width(n_batch, c_orig)
    if w is not None:
        logit = logit.reshape(-1, w)
        target = target.reshape(-1, w)
    n, c = logit.shape

    # ---- tile sizing --------------------------------------------------------
    # Sublane multiple follows the narrowest packed input dtype.
    sub = 8
    for a in (logit, target):
        if a.dtype.itemsize == 2:
            sub = max(sub, 16)
        elif a.dtype.itemsize == 1:
            sub = max(sub, 32)

    # Per-element VMEM: double-buffered inputs (2 bufs x 2 inputs) plus ~6 live
    # f32 elementwise temporaries inside the kernel body.
    in_itemsz = logit.dtype.itemsize + target.dtype.itemsize
    per_elem = 2 * in_itemsz + 24
    if tile_rows is None:
        # v7x: 64 MiB physical per TC -> stay well under; v5e/v6e: 128 MiB.
        budget = (28 if is_v7 else 40) * 1024 * 1024
        tile_rows = budget // (per_elem * c)
        tile_rows = max(sub, min(8192, tile_rows))
    tile_rows = max(sub, (int(tile_rows) // sub) * sub)
    tile_rows = min(tile_rows, _round_up(n, sub))

    vmem_limit = (44 if is_v7 else 64) * 1024 * 1024

    total_blocks = pl.cdiv(n, tile_rows)
    num_splits = max(1, min(int(num_splits), total_blocks))
    steps_per_split = pl.cdiv(total_blocks, num_splits)
    mask_rows = (num_splits * steps_per_split * tile_rows) != n
    last_block = total_blocks - 1

    def row_block(p, j):
        # Clamp so every DMA stays in bounds; over-covered blocks are zeroed
        # by the in-kernel (unclamped-index) row mask.
        return jnp.minimum(p * steps_per_split + j, last_block)

    kernel = functools.partial(
        _focal_kernel,
        gamma=float(gamma),
        n_rows=n,
        tile_rows=tile_rows,
        steps_per_split=steps_per_split,
        mask_rows=mask_rows,
        binary_targets=bool(binary_targets),
        approx_recip=bool(approx_recip),
    )

    partials = pl.pallas_call(
        kernel,
        out_shape=jax.ShapeDtypeStruct((num_splits, 1), jnp.float32),
        grid_spec=pltpu.PrefetchScalarGridSpec(
            num_scalar_prefetch=0,
            grid=(num_splits, steps_per_split),
            in_specs=[
                pl.BlockSpec((tile_rows, c), lambda p, j: (row_block(p, j), 0)),
                pl.BlockSpec((tile_rows, c), lambda p, j: (row_block(p, j), 0)),
            ],
            out_specs=pl.BlockSpec((1, 1), lambda p, j: (p, 0)),
            scratch_shapes=[pltpu.VMEM((8, c), jnp.float32)],
        ),
        compiler_params=pltpu.CompilerParams(
            # leading axis -> both TensorCores on v7x; inner axis is the
            # accumulating reduction.
            dimension_semantics=("parallel", "arbitrary"),
            vmem_limit_bytes=int(vmem_limit),
        ),
    )(logit, target)

    return jnp.sum(partials) / jnp.float32(n_batch)


def _focal_loss_ref(logit, target, gamma=2):
    # pure-JAX reference mirroring the PyTorch forward exactly
    t = target.astype(jnp.float32)
    x = logit.astype(jnp.float32)
    max_val = jnp.maximum(-x, 0.0)
    loss = x - x * t + max_val + jnp.log(jnp.exp(-max_val) + jnp.exp(-x - max_val))
    invprobs = jax.nn.log_sigmoid(-x * (t * 2.0 - 1.0))
    loss = jnp.exp(invprobs * gamma) * loss
    loss = loss.sum(axis=1)
    return loss.mean()


if __name__ == "__main__":
    key = jax.random.PRNGKey(0)
    k1, k2, k3, k4, k5, k6, k7, k8 = jax.random.split(key, 8)

    # Case 1: aligned small problem; bf16 binary targets exercise the
    # reduced-HBM + exp-reuse path; exact divide -> tight tolerance.
    N, C = 16, 128
    logit = jax.random.normal(k1, (N, C), dtype=jnp.float32) * 2.0
    target = (jax.random.uniform(k2, (N, C)) < 0.1).astype(jnp.float32)

    out = focal_loss(logit, target.astype(jnp.bfloat16), gamma=2,
                     approx_recip=False)
    out = jax.block_until_ready(out)
    ref = _focal_loss_ref(logit, target, gamma=2)
    assert jnp.allclose(out, ref, rtol=1e-5, atol=1e-5), (out, ref)

    # Case 2: ragged shape with no lane-dense flat width -> (N, C) fallback,
    # forced small tile + 2-way split exercises index clamping, duplicate-block
    # zeroing and tail-only masking; default approx reciprocal.
    N2, C2 = 50, 200
    logit2 = jax.random.normal(k3, (N2, C2), dtype=jnp.float32) * 2.0
    target2 = (jax.random.uniform(k4, (N2, C2)) < 0.1).astype(jnp.float32)

    out2 = focal_loss(logit2, target2, gamma=2, tile_rows=8, num_splits=2)
    out2 = jax.block_until_ready(out2)
    ref2 = _focal_loss_ref(logit2, target2, gamma=2)
    assert jnp.allclose(out2, ref2, rtol=2e-2, atol=2e-2), (out2, ref2)

    # Case 3: C % 128 != 0 but N*C divisible by 512 -> lane-dense flatten path
    # (reshaped to (-1, 512)), plus tail masking on the flattened rows.
    N3, C3 = 24, 192
    logit3 = jax.random.normal(k5, (N3, C3), dtype=jnp.float32) * 2.0
    target3 = (jax.random.uniform(k6, (N3, C3)) < 0.1).astype(jnp.float32)

    out3 = focal_loss(logit3, target3, gamma=2, tile_rows=8, num_splits=2)
    out3 = jax.block_until_ready(out3)
    ref3 = _focal_loss_ref(logit3, target3, gamma=2)
    assert jnp.allclose(out3, ref3, rtol=2e-2, atol=2e-2), (out3, ref3)

    # Case 4: soft (non-binary) targets -> binary_targets=False path, exact
    # sigmoid, tight tolerance.
    N4, C4 = 16, 128
    logit4 = jax.random.normal(k7, (N4, C4), dtype=jnp.float32) * 2.0
    target4 = jax.random.uniform(k8, (N4, C4), dtype=jnp.float32)

    out4 = focal_loss(logit4, target4, gamma=2,
                      binary_targets=False, approx_recip=False)
    out4 = jax.block_until_ready(out4)
    ref4 = _focal_loss_ref(logit4, target4, gamma=2)
    assert jnp.allclose(out4, ref4, rtol=1e-5, atol=1e-5), (out4, ref4)

    print("KERNEL_OK")
</pallas_src>

<mosaic_0001>
module attributes {stable_mosaic.version = 11 : i64} {
  func.func @_focal_kernel(%arg0: i32, %arg1: i32, %arg2: memref<16x128xf32, #tpu.memory_space<vmem>>, %arg3: memref<16x128xbf16, #tpu.memory_space<vmem>>, %arg4: memref<1x1xf32, #tpu.memory_space<vmem>>, %arg5: memref<8x128xf32, #tpu.memory_space<vmem>>) attributes {dimension_semantics = [#tpu.dimension_semantics<parallel>, #tpu.dimension_semantics<arbitrary>], iteration_bounds = array<i64: 1, 1>, scalar_prefetch = 0 : i64, scratch_operands = 1 : i64, tpu.core_type = #tpu.core_type<tc>, window_params = [{transform_indices = @transform_0, window_bounds = array<i64: 16, 128>}, {transform_indices = @transform_1, window_bounds = array<i64: 16, 128>}, {transform_indices = @transform_2, window_bounds = array<i64: 1, 1>}]} {
    %c0_i32 = arith.constant 0 : i32
    %0 = arith.cmpi eq, %arg1, %c0_i32 : i32
    %1 = arith.extui %0 : i1 to i32
    %c0_i32_0 = arith.constant 0 : i32
    %2 = arith.cmpi ne, %1, %c0_i32_0 : i32
    scf.if %2 {
      %cst_18 = arith.constant 0.000000e+00 : f32
      %40 = vector.broadcast %cst_18 : f32 to vector<8x128xf32>
      %c0_19 = arith.constant 0 : index
      %c0_20 = arith.constant 0 : index
      %41 = vector.load %arg5[%c0_19, %c0_20] : memref<8x128xf32, #tpu.memory_space<vmem>>, vector<8x128xf32>
      tpu.vector_store %arg5[%c0_19, %c0_20], %40 {strides = array<i32>} : memref<8x128xf32, #tpu.memory_space<vmem>>, vector<8x128xf32>,
    } else {
    }
    %c0 = arith.constant 0 : index
    %c0_1 = arith.constant 0 : index
    %3 = vector.load %arg2[%c0, %c0_1] : memref<16x128xf32, #tpu.memory_space<vmem>>, vector<16x128xf32>
    %c0_2 = arith.constant 0 : index
    %c0_3 = arith.constant 0 : index
    %4 = vector.load %arg3[%c0_2, %c0_3] : memref<16x128xbf16, #tpu.memory_space<vmem>>, vector<16x128xbf16>
    %5 = arith.extf %4 : vector<16x128xbf16> to vector<16x128xf32>
    %6 = math.absf %3 : vector<16x128xf32>
    %cst = arith.constant 0.000000e+00 : f32
    %7 = vector.broadcast %cst : f32 to vector<16x128xf32>
    %8 = arith.subf %7, %6 : vector<16x128xf32>
    %9 = math.exp %8 : vector<16x128xf32>
    %cst_4 = arith.constant 0.000000e+00 : f32
    %10 = vector.broadcast %cst_4 : f32 to vector<16x128xf32>
    %11 = arith.maximumf %3, %10 : vector<16x128xf32>
    %12 = arith.mulf %3, %5 : vector<16x128xf32>
    %13 = arith.subf %11, %12 : vector<16x128xf32>
    %14 = math.log1p %9 : vector<16x128xf32>
    %15 = arith.addf %13, %14 : vector<16x128xf32>
    %cst_5 = arith.constant 0.000000e+00 : f32
    %16 = vector.broadcast %cst_5 : f32 to vector<16x128xf32>
    %17 = arith.subf %16, %3 : vector<16x128xf32>
    %cst_6 = arith.constant 2.000000e+00 : f32
    %18 = vector.broadcast %cst_6 : f32 to vector<16x128xf32>
    %19 = arith.mulf %5, %18 : vector<16x128xf32>
    %cst_7 = arith.constant 1.000000e+00 : f32
    %20 = vector.broadcast %cst_7 : f32 to vector<16x128xf32>
    %21 = arith.subf %19, %20 : vector<16x128xf32>
    %22 = arith.mulf %17, %21 : vector<16x128xf32>
    %cst_8 = arith.constant 0.000000e+00 : f32
    %23 = vector.broadcast %cst_8 : f32 to vector<16x128xf32>
    %24 = arith.cmpf oge, %22, %23 : vector<16x128xf32>
    %cst_9 = arith.constant 1.000000e+00 : f32
    %25 = vector.broadcast %cst_9 : f32 to vector<16x128xf32>
    %26 = arith.select %24, %25, %9 : vector<16x128xi1>, vector<16x128xf32>
    %cst_10 = arith.constant 1.000000e+00 : f32
    %27 = vector.broadcast %cst_10 : f32 to vector<16x128xf32>
    %28 = arith.addf %27, %9 : vector<16x128xf32>
    %29 = arith.divf %26, %28 : vector<16x128xf32>
    %30 = arith.mulf %29, %29 : vector<16x128xf32>
    %31 = arith.mulf %30, %15 : vector<16x128xf32>
    %c0_11 = arith.constant 0 : index
    %c0_12 = arith.constant 0 : index
    %32 = vector.load %arg5[%c0_11, %c0_12] : memref<8x128xf32, #tpu.memory_space<vmem>>, vector<8x128xf32>
    %33 = vector.shape_cast %31 : vector<16x128xf32> to vector<2x8x128xf32>
    %cst_13 = arith.constant dense<0.000000e+00> : vector<8x128xf32>
    %34 = vector.multi_reduction <add>, %33, %cst_13 [0] : vector<2x8x128xf32> to vector<8x128xf32>
    %35 = arith.addf %32, %34 : vector<8x128xf32>
    %c0_14 = arith.constant 0 : index
    %c0_15 = arith.constant 0 : index
    %36 = vector.load %arg5[%c0_14, %c0_15] : memref<8x128xf32, #tpu.memory_space<vmem>>, vector<8x128xf32>
    tpu.vector_store %arg5[%c0_14, %c0_15], %35 {strides = array<i32>} : memref<8x128xf32, #tpu.memory_space<vmem>>, vector<8x128xf32>,
    %c0_i32_16 = arith.constant 0 : i32
    %37 = arith.cmpi eq, %arg1, %c0_i32_16 : i32
    %38 = arith.extui %37 : i1 to i32
    %c0_i32_17 = arith.constant 0 : i32
    %39 = arith.cmpi ne, %38, %c0_i32_17 : i32
    scf.if %39 {
      %c0_18 = arith.constant 0 : index
      %c0_19 = arith.constant 0 : index
      %40 = vector.load %arg5[%c0_18, %c0_19] : memref<8x128xf32, #tpu.memory_space<vmem>>, vector<8x128xf32>
      %41 = vector.shape_cast %40 : vector<8x128xf32> to vector<1x8x128xf32>
      %cst_20 = arith.constant dense<0.000000e+00> : vector<1xf32>
      %42 = vector.multi_reduction <add>, %41, %cst_20 [1, 2] : vector<1x8x128xf32> to vector<1xf32>
      %43 = vector.shape_cast %42 : vector<1xf32> to vector<1x1x1xf32>
      %44 = vector.extract %43[0, 0, 0] : f32 from vector<1x1x1xf32>
      %45 = vector.broadcast %44 : f32 to vector<1x1xf32>
      %c0_21 = arith.constant 0 : index
      %c0_22 = arith.constant 0 : index
      %46 = vector.load %arg4[%c0_21, %c0_22] : memref<1x1xf32, #tpu.memory_space<vmem>>, vector<1x1xf32>
      tpu.vector_store %arg4[%c0_21, %c0_22], %45 {strides = array<i32>} : memref<1x1xf32, #tpu.memory_space<vmem>>, vector<1x1xf32>,
    } else {
    }
    return
  }
  func.func @transform_0(%arg0: i32, %arg1: i32) -> (i32, i32) {
    %c1_i32 = arith.constant 1 : i32
    %0 = arith.muli %arg0, %c1_i32 : i32
    %1 = arith.addi %0, %arg1 : i32
    %c0_i32 = arith.constant 0 : i32
    %2 = arith.minsi %1, %c0_i32 : i32
    %c0_i32_0 = arith.constant 0 : i32
    %c0_i32_1 = arith.constant 0 : i32
    return %2, %c0_i32_0 : i32, i32
  }
  func.func @transform_1(%arg0: i32, %arg1: i32) -> (i32, i32) {
    %c1_i32 = arith.constant 1 : i32
    %0 = arith.muli %arg0, %c1_i32 : i32
    %1 = arith.addi %0, %arg1 : i32
    %c0_i32 = arith.constant 0 : i32
    %2 = arith.minsi %1, %c0_i32 : i32
    %c0_i32_0 = arith.constant 0 : i32
    %c0_i32_1 = arith.constant 0 : i32
    return %2, %c0_i32_0 : i32, i32
  }
  func.func @transform_2(%arg0: i32, %arg1: i32) -> (i32, i32) {
    %c0_i32 = arith.constant 0 : i32
    %c0_i32_0 = arith.constant 0 : i32
    return %arg0, %c0_i32 : i32, i32
  }
}

</mosaic_0001>

<bundles_post_ra>
// kernel: tpu_custom_call.1
= control target key start
LH: loop header
LB: loop body
LE: loop exit
PB: predicated region body
PF: predicated region fallthrough
CT: control target
= control target key end

     0   :  { %7 = vsyncpa [#allocation4], 0  ;;  %s324_s0 = inlined_call_operand.hbm [shape: f32[16,128], index: 0, kind: input, shape index: {}]   ;;  %s325_s1 = inlined_call_operand.hbm [shape: bf16[16,128], index: 1, kind: input, shape index: {}]   ;;  %s326_s2 = inlined_call_operand.hbm [shape: f32[1,1], index: 2, kind: output, shape index: {}]  }
   0x1   :  { %8 = vsyncpa [#allocation7], 0 }
   0x2   :  { %9 = vsyncpa [#allocation5], 0  ;;  %s266_s9 = smov [#allocation3]   ;;  %s194_s13 = scalar_lea.hbm %s324_s0, 256 }
   0x3   :  { %s21_s10 = sshll.u32 %s266_s9, 4  ;;  %p195_p0 = scmp.ne.s32.totalorder %s324_s0, %s194_s13  ;;  %s22_s10 = int_to_ptr.vmem [resolvable:$true] %s21_s10 }
   0x4   :  { %p198_p1 = scmp.lt.u32.totalorder %s194_s13, %s324_s0 }
   0x6   :  { %p200_p2 = pnand %p198_p1, %p195_p0 }
   0x8   :  { %203 = shalt.err (!%p200_p2)
}
   0x9   :  { %s204_s18 = scalar_lea.vmem %s22_s10, 256  ;;  %p209_p4 = scmp.lt.s32.totalorder %s22_s10, %s22_s10 }
   0xa   :  { %p205_p3 = scmp.ne.s32.totalorder %s22_s10, %s204_s18  ;;  %p210_p5 = scmp.lt.s32.totalorder %s204_s18, %s204_s18 }
   0xc   :  { %p211_p6 = por %p210_p5, %p209_p4 }
   0xe   :  { %p212_p7 = pnand %p211_p6, %p205_p3 }
  0x10   :  { %215 = shalt.err (!%p212_p7)
}
  0x11   :  { %s267_s19 = smov 128   ;;  %s268_s20 = smov 8  }
  0x12   :  { %27 = dma.hbm_to_vmem [thread:$0]  %s324_s0, 256, %s22_s10, [#allocation4], %s267_s19, %s267_s19, %s268_s20  }
  0x13   :  { %s269_s23 = smov [#allocation6]   ;;  %s216_s27 = scalar_lea.hbm %s325_s1, 128 }
  0x14   :  { %s39_s24 = sshll.u32 %s269_s23, 4  ;;  %p217_p8 = scmp.ne.s32.totalorder %s325_s1, %s216_s27  ;;  %s40_s24 = int_to_ptr.vmem [resolvable:$true] %s39_s24 }
  0x15   :  { %p220_p9 = scmp.lt.u32.totalorder %s216_s27, %s325_s1 }
  0x17   :  { %p222_p10 = pnand %p220_p9, %p217_p8 }
  0x19   :  { %225 = shalt.err (!%p222_p10)
}
  0x1a   :  { %s226_s4 = scalar_lea.vmem %s40_s24, 128  ;;  %p231_p12 = scmp.lt.s32.totalorder %s40_s24, %s40_s24 }
  0x1b   :  { %p227_p11 = scmp.ne.s32.totalorder %s40_s24, %s226_s4  ;;  %p232_p13 = scmp.lt.s32.totalorder %s226_s4, %s226_s4 }
  0x1d   :  { %p233_p0 = por %p232_p13, %p231_p12 }
  0x1f   :  { %p234_p1 = pnand %p233_p0, %p227_p11 }
  0x21   :  { %237 = shalt.err (!%p234_p1)
}
  0x22   :  { %s270_s0 = smov 64   ;;  %s271_s5 = smov 4  }
  0x23   :  { %45 = dma.hbm_to_vmem [thread:$0]  %s325_s1, 128, %s40_s24, [#allocation7], %s270_s0, %s270_s0, %s271_s5  }
  0x24   :  { %260 = dma.done.wait [#allocation4], 256  }
  0x25   :  { %261 = vsyncadd [#allocation4], 4294967040 }
  0x26   :  { %262 = dma.done.wait [#allocation7], 128  }
  0x27   :  { %263 = vsyncadd [#allocation7], 4294967168  ;;  %v65_v0 = vld [vmem:[#allocation3] sm:$0xff]  ;;  %v66_v1 = vld [vmem:[#allocation3 + $0x8] sm:$0xff]  ;;  %s272_s1 = smov [#allocation8]   ;;  %vm145_vm4 = vcmask 0  }
  0x28   :  { %v71_v2 = vand.u32 2147483647, %v65_v0  ;;  %v72_v3 = vand.u32 2147483647, %v66_v1  ;;  %v170_v8 = vld [vmem:[#allocation6] sm:$0xff]   ;;  %v105_v17 = vsub.f32 0.0, %v65_v0 }
  0x29   :  { %v171_v9 = vunpack.c.l.bf16 %v170_v8  ;;  %v172_v10 = vunpack.c.h.bf16 %v170_v8  ;;  %v106_v19 = vsub.f32 0.0, %v66_v1  ;;  %v79_v26 = vmax.f32 %v65_v0, 0.0  ;;  %s153_s8 = sshll.u32 %s272_s1, 4  ;;  %s154_s8 = int_to_ptr.vmem [resolvable:$true] %s153_s8 }
  0x2a   :  { %v73_v4 = vsub.f32 0.0, %v71_v2  ;;  %v74_v5 = vsub.f32 0.0, %v72_v3  ;;  %v80_v30 = vmax.f32 %v66_v1, 0.0  ;;  %s238_s10 = scalar_lea.vmem %s154_s8, 16  ;;  %s242_s11 = scalar_lea.vmem %s154_s8, 32 }
  0x2b   :  { %v107_v11 = vmul.f32 2.0, %v171_v9  ;;  %v108_v12 = vmul.f32 2.0, %v172_v10  ;;  %v81_v27 = vmul.f32 %v171_v9, %v65_v0  ;;  %v82_v31 = vmul.f32 %v172_v10, %v66_v1  ;;  %p239_p2 = scmp.ne.s32.totalorder %s154_s8, %s238_s10  ;;  %p243_p3 = scmp.lt.s32.totalorder %s154_s8, %s154_s8 }
  0x2c   :  { %v75_v6 = vmul.f32 1.442695, %v73_v4  ;;  %v77_v7 = vmul.f32 1.442695, %v74_v5  ;;  %p244_p4 = scmp.lt.s32.totalorder %s242_s11, %s238_s10 }
  0x2d   :  { %v167_v18 = vadd.f32 -1.0, %v107_v11  ;;  %v168_v20 = vadd.f32 -1.0, %v108_v12  ;;  %v83_v35 = vsub.f32 %v79_v26, %v81_v27  ;;  %v84_v39 = vsub.f32 %v80_v30, %v82_v31 }
  0x2e   :  { %182 = vpow2.f32 %v75_v6  ;;  %p245_p5 = por %p244_p4, %p243_p3 }
  0x2f   :  { %184 = vpow2.f32 %v77_v7  ;;  %v111_v23 = vmul.f32 %v167_v18, %v105_v17  ;;  %v112_v24 = vmul.f32 %v168_v20, %v106_v19 }
  0x30   :  { %p246_p6 = pnand %p245_p5, %p239_p2 }
  0x31   :  { %vm113_vm0 = vcmp.ge.f32.partialorder %v111_v23, 0.0  ;;  %vm114_vm1 = vcmp.ge.f32.partialorder %v112_v24, 0.0 }
  0x38   :  { %v183_v13 = vpop.eup %182 }
  0x39   :  { %v185_v14 = vpop.eup %184  ;;  %v85_v15 = vadd.f32 1.0, %v183_v13  ;;  %v88_v21 = vmul.f32 -0.5, %v183_v13  ;;  %v91_v28 = vand.u32 2147483647, %v183_v13  ;;  %v115_v37 = vsel %vm113_vm0, 1.0, %v183_v13 }
  0x3a   :  { %v94_v16 = vadd.f32 1.0, %v185_v14  ;;  %v97_v22 = vmul.f32 -0.5, %v185_v14  ;;  %v100_v32 = vand.u32 2147483647, %v185_v14  ;;  %v116_v41 = vsel %vm114_vm1, 1.0, %v185_v14 }
  0x3b   :  { %186 = vlog2.f32 %v85_v15  ;;  %v89_v25 = vadd.f32 1.0, %v88_v21  ;;  %vm92_vm2 = vcmp.lt.f32.partialorder %v91_v28, 0.0004427343 }
  0x3c   :  { %188 = vlog2.f32 %v94_v16  ;;  %v98_v29 = vadd.f32 1.0, %v97_v22  ;;  %vm101_vm3 = vcmp.lt.f32.partialorder %v100_v32, 0.0004427343 }
  0x3d   :  { %190 = vrcp.f32 %v85_v15  ;;  %v90_v33 = vmul.f32 %v183_v13, %v89_v25 }
  0x3e   :  { %192 = vrcp.f32 %v94_v16  ;;  %v99_v36 = vmul.f32 %v185_v14, %v98_v29 }
  0x45   :  { %v187_v34 = vpop.eup %186 }
  0x46   :  { %v189_v38 = vpop.eup %188  ;;  %v87_v40 = vmul.f32 0.6931472, %v187_v34 }
  0x47   :  { %v191_v42 = vpop.eup %190  ;;  %v96_v43 = vmul.f32 0.6931472, %v189_v38 }
  0x48   :  { %v193_v44 = vpop.eup %192  ;;  %v93_v45 = vsel %vm92_vm2, %v90_v33, %v87_v40  ;;  %v120_v46 = vmul.f32 %v191_v42, %v115_v37 }
  0x49   :  { %v102_v47 = vsel %vm101_vm3, %v99_v36, %v96_v43  ;;  %v103_v48 = vadd.f32 %v93_v45, %v83_v35  ;;  %v122_v49 = vmul.f32 %v193_v44, %v116_v41 }
  0x4a   :  { %v104_v50 = vadd.f32 %v102_v47, %v84_v39  ;;  %v123_v51 = vmul.f32 %v120_v46, %v120_v46 }
  0x4b   :  { %v124_v52 = vmul.f32 %v122_v49, %v122_v49 }
  0x4c   :  { %v125_v53 = vmul.f32 %v123_v51, %v103_v48 }
  0x4d   :  { %v126_v54 = vmul.f32 %v124_v52, %v104_v50 }
  0x4f   :  { %v128_v55 = vadd.f32 %v126_v54, %v125_v53 }
  0x51   :  { %135 = vadd.xlane.f32.xlu0 %v128_v55 }
  0xde   :  { %v136_v56 = vpop.xlane.xlu0 %135 }
  0xdf   :  { %v137_v57 = vrot.slane %v136_v56, 4 }
  0xe1   :  { %v138_v58 = vadd.f32 %v137_v57, %v136_v56 }
  0xe3   :  { %v139_v59 = vrot.slane %v138_v58, 2 }
  0xe5   :  { %v140_v60 = vadd.f32 %v139_v59, %v138_v58 }
  0xe7   :  { %v141_v61 = vrot.slane %v140_v60, 1 }
  0xe9   :  { %v142_v62 = vadd.f32 %v141_v61, %v140_v60 }
  0xeb   :  { %173 = vpush %v142_v62 }
 0x11c   :  { %s174_s9 = spop %173 }
 0x11d   :  { %v144_v63 = vstv %s174_s9 }
 0x11e   :  { %146 = vst.msk [vmem:[#allocation8] sm:$0x1] %vm145_vm4, %v144_v63 }
 0x11f   :  { %249 = shalt.err (!%p246_p6)
}
 0x120   :  { %s250_s14 = scalar_lea.hbm %s326_s2, 16 }
 0x121   :  { %p251_p7 = scmp.ne.s32.totalorder %s326_s2, %s250_s14  ;;  %p254_p8 = scmp.lt.u32.totalorder %s250_s14, %s326_s2 }
 0x123   :  { %p256_p9 = pnand %p254_p8, %p251_p7 }
 0x125   :  { %259 = shalt.err (!%p256_p9)
}
 0x126   :  { %156 = dma.vmem_to_hbm [thread:$0]  %s154_s8, 16, %s326_s2, [#allocation5]  }
 0x127   :  { %264 = dma.done.wait [#allocation5], 16  }
 0x128   :  { %265 = vsyncadd [#allocation5], 4294967280 }
 0x129   :  { %160 = vsyncpa [#allocation4], 1 }
 0x12a   :  { %161 = vsyncpa [#allocation7], 1 }
 0x12b   :  { %162 = vsyncpa [#allocation5], 1 }

</bundles_post_ra>
